<compile_context>
chip_gen: v5e
topology: v5e:2x2
jax: 0.10.0
libtpu: 0.0.40
codegen_flags: <defaults>
</compile_context>

<pallas_src>
import functools
import itertools

import numpy as np
import jax
import jax.numpy as jnp
from jax import lax
from jax.experimental import pallas as pl
from jax.experimental.pallas import tpu as pltpu


def _gtv_kernel(x_ref, w_ref, o_ref, *, edge_delta, H, W):
    """x_ref: (C, blk, HW)   w_ref: (E, blk, HW)   o_ref: (C, blk, HW)."""
    HW = H * W
    x = x_ref[...].astype(jnp.float32)        # (C, blk, HW)
    wts = w_ref[...].astype(jnp.float32)      # (E, blk, HW)
    w2 = wts * wts                            # op_C and op_C^T both multiply by w_e

    # ---- lane-only boundary masks, built once per grid step -----------------
    lane = lax.broadcasted_iota(jnp.int32, (1, 1, HW), 2)
    col = lane % W
    first_col = col == 0
    last_col = col == W - 1
    first_row = lane < W
    last_row = lane >= HW - W

    def boundary_mask(dh, dw):
        # Lanes whose (h+dh, w+dw) neighbour is clamped by replicate padding.
        m = None
        if dh > 0:
            m = last_row
        elif dh < 0:
            m = first_row
        if dw > 0:
            m = last_col if m is None else (m | last_col)
        elif dw < 0:
            m = first_col if m is None else (m | first_col)
        return m

    axis_set = {(dh, dw) for dh, dw in edge_delta
                if (dh == 0) != (dw == 0)}                       # exactly one nonzero
    diag_set = {(dh, dw) for dh, dw in edge_delta if dh != 0 and dw != 0}

    # {0,1} f32 lane masks, precomputed once and reused (no per-edge rebroadcasted
    # boolean selects for the axis edges).
    keep_nbr = {d: jnp.where(boundary_mask(*d), 0.0, 1.0).astype(jnp.float32)[0]   # (1, HW)
                for d in axis_set}
    keep_scat = {d: jnp.where(boundary_mask(-d[0], -d[1]), 0.0, 1.0).astype(jnp.float32)
                 for d in diag_set}                                                  # (1,1,HW)

    # dh-shifted copies of x, shared by axis edges (plain roll) and diagonal
    # edges (replicate-clamped version).
    need_h = sorted({dh for dh, dw in edge_delta if dh != 0})
    x_roll_h = {dh: pltpu.roll(x, (-dh * W) % HW, axis=2) for dh in need_h}
    diag_dh = sorted({dh for dh, dw in diag_set})
    x_rep_h = {dh: jnp.where(last_row if dh > 0 else first_row, x, x_roll_h[dh])
               for dh in diag_dh}

    acc = jnp.zeros_like(x)
    # TODO(synk): if bundle dumps show the 2 XLUs (v6e/v7x) as the binding slot,
    # the shift/scatter rolls could be moved to the idle MXU via a banded HWxHW
    # shift matrix; not done here since VPU was the measured binder.
    for e, (dh, dw) in enumerate(edge_delta):
        if dh == 0 and dw == 0:
            continue                                      # center tap (window excludes it)
        shift = (dh * W + dw) % HW
        if (dh, dw) in axis_set:
            # Axis-aligned edge: single fused roll; replicate clamp folded into the
            # weight (clamped positions have x - nbr == 0 exactly), and the wrapped
            # scatter sources already carry t == 0, so no post-roll mask is needed.
            nbr = x_roll_h[dh] if dw == 0 else pltpu.roll(x, (-dw) % HW, axis=2)
            t = (x - nbr) * (w2[e] * keep_nbr[(dh, dw)])          # bcast over leading C
            acc = acc + t - pltpu.roll(t, shift, axis=2)
        else:
            # Diagonal edge: two-step replicate shift (the single-corner clamp is not
            # a simple lane mask), then masked scatter via an f32 multiply.
            xh = x_rep_h[dh]
            rolled = pltpu.roll(xh, (-dw) % HW, axis=2)
            nbr = jnp.where(last_col if dw > 0 else first_col, xh, rolled)
            t = (x - nbr) * w2[e]
            scat = pltpu.roll(t, shift, axis=2) * keep_scat[(dh, dw)]
            acc = acc + t - scat

    o_ref[...] = acc.astype(o_ref.dtype)


def _round_up(a, m):
    return -(-a // m) * m


def _tpu_generation_params():
    """(vmem_budget_bytes, vmem_limit_bytes, num_tensorcores) per TPU generation."""
    kind = ""
    try:
        kind = jax.devices()[0].device_kind.lower()
    except Exception:
        pass
    if "v7" in kind:
        # 64 MiB VMEM per TC, 2 TCs per chip: leave explicit headroom for Mosaic
        # internal scratch / spills from the unrolled edge loop.
        return 32 << 20, 48 << 20, 2
    if "v6" in kind or "v5" in kind or "v4" in kind:
        # 128 MiB physical VMEM, single TC per chip (v5e/v6e).
        return 64 << 20, 100 << 20, 1
    # Unknown device: conservative (v7x-safe).
    return 32 << 20, 48 << 20, 1


def _choose_block(N, C, E, HW, itemsize, vmem_budget, num_cores):
    """Pick blk (multiple of 8 sublanes) and the padded N it tiles evenly."""
    # Per-(B*G)-row VMEM footprint: double-buffered I/O tiles + f32 temporaries
    # (x, shared rolls, acc, t, scat, weights) -- deliberately over-estimated so
    # big blocks do not hit vmem_limit_bytes or force hidden spills.
    per_row = 2 * (2 * C + E) * HW * itemsize + (10 * C + 2 * E) * HW * 4
    blk = max(8, (int(vmem_budget) // int(per_row)) // 8 * 8)
    n8 = _round_up(max(N, 1), 8)
    blk = min(blk, n8)
    if num_cores > 1:
        # Multi-TC part: prefer >= num_cores grid steps so the "parallel" axis
        # shards/balances across TensorCores (only if it keeps blk >= 8).
        blk = min(blk, max(8, _round_up(-(-n8 // num_cores), 8)))
    n_padded = _round_up(N, blk)
    return blk, n_padded


def gtv_forward(patchs, edge_weights, node_degree, edge_delta):
    """Pallas TPU implementation of GTVFast.forward (op_C then op_C_transpose)."""
    del node_degree                                   # unused by the PyTorch forward too
    B, G, C, H, W = patchs.shape
    E = edge_weights.shape[2]
    N, HW = B * G, H * W
    edge_delta = tuple((int(a), int(b)) for a, b in edge_delta)
    # TODO(synk): shifts assume a 3x3 connection window (|dh|,|dw| <= 1); larger
    # windows need a generalized replicate clamp at the row/column boundaries.
    assert all(abs(dh) <= 1 and abs(dw) <= 1 for dh, dw in edge_delta)
    # Note: H*W that is a multiple of 128 gives unmasked lane-dense stores
    # (HW = 256 here); other sizes still work but fall back to masked stores.

    vmem_budget, vmem_limit, num_cores = _tpu_generation_params()
    itemsize = np.dtype(patchs.dtype).itemsize
    blk, n_padded = _choose_block(N, C, E, HW, itemsize, vmem_budget, num_cores)

    # Sublane-dense layout: (C/E, N_padded, HW) with the padded batch*graph axis
    # on sublanes (multiple of 8) and HW on lanes.  Padded rows are zeros and
    # produce zero outputs that are sliced away below.
    x = patchs.reshape(N, C, HW)
    w = edge_weights.reshape(N, E, HW)
    if n_padded != N:
        pad = ((0, n_padded - N), (0, 0), (0, 0))
        x = jnp.pad(x, pad)
        w = jnp.pad(w, pad)
    x = jnp.transpose(x, (1, 0, 2))                   # (C, Np, HW)
    w = jnp.transpose(w, (1, 0, 2))                   # (E, Np, HW)

    kernel = functools.partial(_gtv_kernel, edge_delta=edge_delta, H=H, W=W)
    out = pl.pallas_call(
        kernel,
        out_shape=jax.ShapeDtypeStruct((C, n_padded, HW), patchs.dtype),
        grid_spec=pltpu.PrefetchScalarGridSpec(
            num_scalar_prefetch=0,
            grid=(n_padded // blk,),
            in_specs=[
                pl.BlockSpec((C, blk, HW), lambda i: (0, i, 0)),
                pl.BlockSpec((E, blk, HW), lambda i: (0, i, 0)),
            ],
            out_specs=pl.BlockSpec((C, blk, HW), lambda i: (0, i, 0)),
        ),
        compiler_params=pltpu.CompilerParams(
            dimension_semantics=("parallel",),
            vmem_limit_bytes=vmem_limit,
        ),
    )(x, w)
    out = jnp.transpose(out, (1, 0, 2))[:N]
    return out.reshape(B, G, C, H, W)


def gtv_forward_ref(patchs, edge_weights, edge_delta):
    """Plain-JAX mirror of the PyTorch forward (for correctness checking)."""
    B, G, C, H, W = patchs.shape
    padH, padW = np.abs(np.asarray(edge_delta).min(axis=0))
    xp = jnp.pad(patchs, ((0, 0), (0, 0), (0, 0), (padH, padH), (padW, padW)),
                 mode="edge")
    ts = []
    for e, (dh, dw) in enumerate(edge_delta):
        nbr = xp[:, :, :, padH + dh:padH + dh + H, padW + dw:padW + dw + W]
        we = edge_weights[:, :, None, e]
        ts.append((patchs - nbr) * we * we)
    base = sum(ts)
    P = jnp.pad(base, ((0, 0), (0, 0), (0, 0), (padH, padH), (padW, padW)),
                mode="edge")
    for e, (dh, dw) in enumerate(edge_delta):
        P = P.at[:, :, :, padH + dh:padH + dh + H, padW + dw:padW + dw + W].add(-ts[e])
    return P[:, :, :, padH:padH + H, padW:padW + W]


if __name__ == "__main__":
    # Module config (mirrors GTVFast.__init__): 3x3 connection window, center off.
    connection_window = np.ones((3, 3), dtype=np.int32)
    connection_window[1, 1] = 0
    window_size = connection_window.shape[0]
    m = np.arange(window_size) - window_size // 2
    edge_delta_all = np.array(list(itertools.product(m, m)), dtype=np.int32)
    edge_delta = edge_delta_all[connection_window.reshape(-1) == 1]
    n_edges = int((connection_window == 1).sum())          # 8

    B, G, C, H, W = 2, 2, 3, 16, 16

    key = jax.random.PRNGKey(0)
    k1, k2 = jax.random.split(key, 2)
    patchs = jax.random.normal(k1, (B, G, C, H, W), dtype=jnp.float32)
    edge_weights = jax.nn.softmax(
        jax.random.normal(k2, (B, G, n_edges, H, W), dtype=jnp.float32), axis=2)
    node_degree = edge_weights.sum(axis=2)

    out = gtv_forward(patchs, edge_weights, node_degree, edge_delta)
    out = jax.block_until_ready(out)

    ref = gtv_forward_ref(patchs, edge_weights, edge_delta)
    np.testing.assert_allclose(np.asarray(out), np.asarray(ref), rtol=1e-5, atol=1e-5)
    print("KERNEL_OK")
</pallas_src>

<mosaic_0001>
module attributes {stable_mosaic.version = 11 : i64} {
  func.func @_gtv_kernel(%arg0: i32, %arg1: memref<3x8x256xf32, #tpu.memory_space<vmem>>, %arg2: memref<8x8x256xf32, #tpu.memory_space<vmem>>, %arg3: memref<3x8x256xf32, #tpu.memory_space<vmem>>) attributes {dimension_semantics = [#tpu.dimension_semantics<parallel>], iteration_bounds = array<i64: 1>, scalar_prefetch = 0 : i64, scratch_operands = 0 : i64, tpu.core_type = #tpu.core_type<tc>, window_params = [{transform_indices = @transform_0, window_bounds = array<i64: 3, 8, 256>}, {transform_indices = @transform_1, window_bounds = array<i64: 8, 8, 256>}, {transform_indices = @transform_2, window_bounds = array<i64: 3, 8, 256>}]} {
    %c0 = arith.constant 0 : index
    %c0_0 = arith.constant 0 : index
    %c0_1 = arith.constant 0 : index
    %0 = vector.load %arg1[%c0, %c0_0, %c0_1] : memref<3x8x256xf32, #tpu.memory_space<vmem>>, vector<3x8x256xf32>
    %c0_2 = arith.constant 0 : index
    %c0_3 = arith.constant 0 : index
    %c0_4 = arith.constant 0 : index
    %1 = vector.load %arg2[%c0_2, %c0_3, %c0_4] : memref<8x8x256xf32, #tpu.memory_space<vmem>>, vector<8x8x256xf32>
    %2 = arith.mulf %1, %1 : vector<8x8x256xf32>
    %3 = tpu.iota {dimensions = array<i32: 2>} : vector<1x1x256xi32>
    %c16_i32 = arith.constant 16 : i32
    %c0_i32 = arith.constant 0 : i32
    %4 = arith.cmpi eq, %c16_i32, %c0_i32 : i32
    %c1_i32 = arith.constant 1 : i32
    %5 = arith.select %4, %c1_i32, %c16_i32 : i32
    %6 = vector.broadcast %5 : i32 to vector<1x1x256xi32>
    %7 = arith.remsi %3, %6 : vector<1x1x256xi32>
    %c0_i32_5 = arith.constant 0 : i32
    %8 = vector.broadcast %c0_i32_5 : i32 to vector<1x1x256xi32>
    %9 = arith.cmpi ne, %7, %8 : vector<1x1x256xi32>
    %c0_i32_6 = arith.constant 0 : i32
    %10 = vector.broadcast %c0_i32_6 : i32 to vector<1x1x256xi32>
    %11 = arith.cmpi slt, %7, %10 : vector<1x1x256xi32>
    %c0_i32_7 = arith.constant 0 : i32
    %12 = arith.cmpi slt, %5, %c0_i32_7 : i32
    %13 = vector.broadcast %12 : i1 to vector<1x1x256xi1>
    %14 = vector.broadcast %13 : vector<1x1x256xi1> to vector<1x1x256xi1>
    %15 = arith.xori %11, %14 : vector<1x1x256xi1>
    %16 = arith.andi %15, %9 : vector<1x1x256xi1>
    %17 = vector.broadcast %5 : i32 to vector<1x1x256xi32>
    %18 = arith.addi %7, %17 : vector<1x1x256xi32>
    %19 = arith.select %16, %18, %7 : vector<1x1x256xi1>, vector<1x1x256xi32>
    %c0_i32_8 = arith.constant 0 : i32
    %20 = vector.broadcast %c0_i32_8 : i32 to vector<1x1x256xi32>
    %21 = arith.cmpi eq, %19, %20 : vector<1x1x256xi32>
    %c15_i32 = arith.constant 15 : i32
    %22 = vector.broadcast %c15_i32 : i32 to vector<1x1x256xi32>
    %23 = arith.cmpi eq, %19, %22 : vector<1x1x256xi32>
    %c16_i32_9 = arith.constant 16 : i32
    %24 = vector.broadcast %c16_i32_9 : i32 to vector<1x1x256xi32>
    %25 = arith.cmpi slt, %3, %24 : vector<1x1x256xi32>
    %c240_i32 = arith.constant 240 : i32
    %26 = vector.broadcast %c240_i32 : i32 to vector<1x1x256xi32>
    %27 = arith.cmpi sge, %3, %26 : vector<1x1x256xi32>
    %cst = arith.constant 0.000000e+00 : f32
    %cst_10 = arith.constant 1.000000e+00 : f32
    %28 = vector.broadcast %cst : f32 to vector<1x1x256xf32>
    %29 = vector.broadcast %cst_10 : f32 to vector<1x1x256xf32>
    %30 = arith.select %25, %28, %29 : vector<1x1x256xi1>, vector<1x1x256xf32>
    %31 = vector.shape_cast %30 : vector<1x1x256xf32> to vector<1x256xf32>
    %cst_11 = arith.constant 0.000000e+00 : f32
    %cst_12 = arith.constant 1.000000e+00 : f32
    %32 = vector.broadcast %cst_11 : f32 to vector<1x1x256xf32>
    %33 = vector.broadcast %cst_12 : f32 to vector<1x1x256xf32>
    %34 = arith.select %27, %32, %33 : vector<1x1x256xi1>, vector<1x1x256xf32>
    %35 = vector.shape_cast %34 : vector<1x1x256xf32> to vector<1x256xf32>
    %cst_13 = arith.constant 0.000000e+00 : f32
    %cst_14 = arith.constant 1.000000e+00 : f32
    %36 = vector.broadcast %cst_13 : f32 to vector<1x1x256xf32>
    %37 = vector.broadcast %cst_14 : f32 to vector<1x1x256xf32>
    %38 = arith.select %21, %36, %37 : vector<1x1x256xi1>, vector<1x1x256xf32>
    %39 = vector.shape_cast %38 : vector<1x1x256xf32> to vector<1x256xf32>
    %cst_15 = arith.constant 0.000000e+00 : f32
    %cst_16 = arith.constant 1.000000e+00 : f32
    %40 = vector.broadcast %cst_15 : f32 to vector<1x1x256xf32>
    %41 = vector.broadcast %cst_16 : f32 to vector<1x1x256xf32>
    %42 = arith.select %23, %40, %41 : vector<1x1x256xi1>, vector<1x1x256xf32>
    %43 = vector.shape_cast %42 : vector<1x1x256xf32> to vector<1x256xf32>
    %44 = arith.ori %27, %21 : vector<1x1x256xi1>
    %cst_17 = arith.constant 0.000000e+00 : f32
    %cst_18 = arith.constant 1.000000e+00 : f32
    %45 = vector.broadcast %cst_17 : f32 to vector<1x1x256xf32>
    %46 = vector.broadcast %cst_18 : f32 to vector<1x1x256xf32>
    %47 = arith.select %44, %45, %46 : vector<1x1x256xi1>, vector<1x1x256xf32>
    %48 = arith.ori %25, %21 : vector<1x1x256xi1>
    %cst_19 = arith.constant 0.000000e+00 : f32
    %cst_20 = arith.constant 1.000000e+00 : f32
    %49 = vector.broadcast %cst_19 : f32 to vector<1x1x256xf32>
    %50 = vector.broadcast %cst_20 : f32 to vector<1x1x256xf32>
    %51 = arith.select %48, %49, %50 : vector<1x1x256xi1>, vector<1x1x256xf32>
    %52 = arith.ori %25, %23 : vector<1x1x256xi1>
    %cst_21 = arith.constant 0.000000e+00 : f32
    %cst_22 = arith.constant 1.000000e+00 : f32
    %53 = vector.broadcast %cst_21 : f32 to vector<1x1x256xf32>
    %54 = vector.broadcast %cst_22 : f32 to vector<1x1x256xf32>
    %55 = arith.select %52, %53, %54 : vector<1x1x256xi1>, vector<1x1x256xf32>
    %56 = arith.ori %27, %23 : vector<1x1x256xi1>
    %cst_23 = arith.constant 0.000000e+00 : f32
    %cst_24 = arith.constant 1.000000e+00 : f32
    %57 = vector.broadcast %cst_23 : f32 to vector<1x1x256xf32>
    %58 = vector.broadcast %cst_24 : f32 to vector<1x1x256xf32>
    %59 = arith.select %56, %57, %58 : vector<1x1x256xi1>, vector<1x1x256xf32>
    %c16_i32_25 = arith.constant 16 : i32
    %60 = tpu.dynamic_rotate %0 by %c16_i32_25 dim 2 : vector<3x8x256xf32>, i32 -> vector<3x8x256xf32>
    %c240_i32_26 = arith.constant 240 : i32
    %61 = tpu.dynamic_rotate %0 by %c240_i32_26 dim 2 : vector<3x8x256xf32>, i32 -> vector<3x8x256xf32>
    %62 = vector.shape_cast %25 : vector<1x1x256xi1> to vector<1x1x256xi1>
    %63 = vector.broadcast %62 : vector<1x1x256xi1> to vector<3x8x256xi1>
    %64 = arith.select %63, %0, %60 : vector<3x8x256xi1>, vector<3x8x256xf32>
    %65 = vector.shape_cast %27 : vector<1x1x256xi1> to vector<1x1x256xi1>
    %66 = vector.broadcast %65 : vector<1x1x256xi1> to vector<3x8x256xi1>
    %67 = arith.select %66, %0, %61 : vector<3x8x256xi1>, vector<3x8x256xf32>
    %cst_27 = arith.constant 0.000000e+00 : f32
    %68 = vector.broadcast %cst_27 : f32 to vector<3x8x256xf32>
    %c1_i32_28 = arith.constant 1 : i32
    %69 = tpu.dynamic_rotate %64 by %c1_i32_28 dim 2 : vector<3x8x256xf32>, i32 -> vector<3x8x256xf32>
    %70 = vector.shape_cast %21 : vector<1x1x256xi1> to vector<1x1x256xi1>
    %71 = vector.broadcast %70 : vector<1x1x256xi1> to vector<3x8x256xi1>
    %72 = arith.select %71, %64, %69 : vector<3x8x256xi1>, vector<3x8x256xf32>
    %73 = arith.subf %0, %72 : vector<3x8x256xf32>
    %74 = vector.extract_strided_slice %2 {offsets = [0, 0, 0], sizes = [1, 8, 256], strides = [1, 1, 1]} : vector<8x8x256xf32> to vector<1x8x256xf32>
    %75 = vector.shape_cast %74 : vector<1x8x256xf32> to vector<8x256xf32>
    %76 = vector.shape_cast %75 : vector<8x256xf32> to vector<1x8x256xf32>
    %77 = vector.broadcast %76 : vector<1x8x256xf32> to vector<3x8x256xf32>
    %78 = arith.mulf %73, %77 : vector<3x8x256xf32>
    %c239_i32 = arith.constant 239 : i32
    %79 = tpu.dynamic_rotate %78 by %c239_i32 dim 2 : vector<3x8x256xf32>, i32 -> vector<3x8x256xf32>
    %80 = vector.broadcast %59 : vector<1x1x256xf32> to vector<3x8x256xf32>
    %81 = arith.mulf %79, %80 : vector<3x8x256xf32>
    %82 = arith.addf %68, %78 : vector<3x8x256xf32>
    %83 = arith.subf %82, %81 : vector<3x8x256xf32>
    %84 = arith.subf %0, %60 : vector<3x8x256xf32>
    %85 = vector.extract_strided_slice %2 {offsets = [1, 0, 0], sizes = [1, 8, 256], strides = [1, 1, 1]} : vector<8x8x256xf32> to vector<1x8x256xf32>
    %86 = vector.shape_cast %85 : vector<1x8x256xf32> to vector<8x256xf32>
    %87 = vector.broadcast %31 : vector<1x256xf32> to vector<8x256xf32>
    %88 = arith.mulf %86, %87 : vector<8x256xf32>
    %89 = vector.shape_cast %88 : vector<8x256xf32> to vector<1x8x256xf32>
    %90 = vector.broadcast %89 : vector<1x8x256xf32> to vector<3x8x256xf32>
    %91 = arith.mulf %84, %90 : vector<3x8x256xf32>
    %92 = arith.addf %83, %91 : vector<3x8x256xf32>
    %c240_i32_29 = arith.constant 240 : i32
    %93 = tpu.dynamic_rotate %91 by %c240_i32_29 dim 2 : vector<3x8x256xf32>, i32 -> vector<3x8x256xf32>
    %94 = arith.subf %92, %93 : vector<3x8x256xf32>
    %c255_i32 = arith.constant 255 : i32
    %95 = tpu.dynamic_rotate %64 by %c255_i32 dim 2 : vector<3x8x256xf32>, i32 -> vector<3x8x256xf32>
    %96 = vector.shape_cast %23 : vector<1x1x256xi1> to vector<1x1x256xi1>
    %97 = vector.broadcast %96 : vector<1x1x256xi1> to vector<3x8x256xi1>
    %98 = arith.select %97, %64, %95 : vector<3x8x256xi1>, vector<3x8x256xf32>
    %99 = arith.subf %0, %98 : vector<3x8x256xf32>
    %100 = vector.extract_strided_slice %2 {offsets = [2, 0, 0], sizes = [1, 8, 256], strides = [1, 1, 1]} : vector<8x8x256xf32> to vector<1x8x256xf32>
    %101 = vector.shape_cast %100 : vector<1x8x256xf32> to vector<8x256xf32>
    %102 = vector.shape_cast %101 : vector<8x256xf32> to vector<1x8x256xf32>
    %103 = vector.broadcast %102 : vector<1x8x256xf32> to vector<3x8x256xf32>
    %104 = arith.mulf %99, %103 : vector<3x8x256xf32>
    %c241_i32 = arith.constant 241 : i32
    %105 = tpu.dynamic_rotate %104 by %c241_i32 dim 2 : vector<3x8x256xf32>, i32 -> vector<3x8x256xf32>
    %106 = vector.broadcast %47 : vector<1x1x256xf32> to vector<3x8x256xf32>
    %107 = arith.mulf %105, %106 : vector<3x8x256xf32>
    %108 = arith.addf %94, %104 : vector<3x8x256xf32>
    %109 = arith.subf %108, %107 : vector<3x8x256xf32>
    %c1_i32_30 = arith.constant 1 : i32
    %110 = tpu.dynamic_rotate %0 by %c1_i32_30 dim 2 : vector<3x8x256xf32>, i32 -> vector<3x8x256xf32>
    %111 = arith.subf %0, %110 : vector<3x8x256xf32>
    %112 = vector.extract_strided_slice %2 {offsets = [3, 0, 0], sizes = [1, 8, 256], strides = [1, 1, 1]} : vector<8x8x256xf32> to vector<1x8x256xf32>
    %113 = vector.shape_cast %112 : vector<1x8x256xf32> to vector<8x256xf32>
    %114 = vector.broadcast %39 : vector<1x256xf32> to vector<8x256xf32>
    %115 = arith.mulf %113, %114 : vector<8x256xf32>
    %116 = vector.shape_cast %115 : vector<8x256xf32> to vector<1x8x256xf32>
    %117 = vector.broadcast %116 : vector<1x8x256xf32> to vector<3x8x256xf32>
    %118 = arith.mulf %111, %117 : vector<3x8x256xf32>
    %119 = arith.addf %109, %118 : vector<3x8x256xf32>
    %c255_i32_31 = arith.constant 255 : i32
    %120 = tpu.dynamic_rotate %118 by %c255_i32_31 dim 2 : vector<3x8x256xf32>, i32 -> vector<3x8x256xf32>
    %121 = arith.subf %119, %120 : vector<3x8x256xf32>
    %c255_i32_32 = arith.constant 255 : i32
    %122 = tpu.dynamic_rotate %0 by %c255_i32_32 dim 2 : vector<3x8x256xf32>, i32 -> vector<3x8x256xf32>
    %123 = arith.subf %0, %122 : vector<3x8x256xf32>
    %124 = vector.extract_strided_slice %2 {offsets = [4, 0, 0], sizes = [1, 8, 256], strides = [1, 1, 1]} : vector<8x8x256xf32> to vector<1x8x256xf32>
    %125 = vector.shape_cast %124 : vector<1x8x256xf32> to vector<8x256xf32>
    %126 = vector.broadcast %43 : vector<1x256xf32> to vector<8x256xf32>
    %127 = arith.mulf %125, %126 : vector<8x256xf32>
    %128 = vector.shape_cast %127 : vector<8x256xf32> to vector<1x8x256xf32>
    %129 = vector.broadcast %128 : vector<1x8x256xf32> to vector<3x8x256xf32>
    %130 = arith.mulf %123, %129 : vector<3x8x256xf32>
    %131 = arith.addf %121, %130 : vector<3x8x256xf32>
    %c1_i32_33 = arith.constant 1 : i32
    %132 = tpu.dynamic_rotate %130 by %c1_i32_33 dim 2 : vector<3x8x256xf32>, i32 -> vector<3x8x256xf32>
    %133 = arith.subf %131, %132 : vector<3x8x256xf32>
    %c1_i32_34 = arith.constant 1 : i32
    %134 = tpu.dynamic_rotate %67 by %c1_i32_34 dim 2 : vector<3x8x256xf32>, i32 -> vector<3x8x256xf32>
    %135 = vector.shape_cast %21 : vector<1x1x256xi1> to vector<1x1x256xi1>
    %136 = vector.broadcast %135 : vector<1x1x256xi1> to vector<3x8x256xi1>
    %137 = arith.select %136, %67, %134 : vector<3x8x256xi1>, vector<3x8x256xf32>
    %138 = arith.subf %0, %137 : vector<3x8x256xf32>
    %139 = vector.extract_strided_slice %2 {offsets = [5, 0, 0], sizes = [1, 8, 256], strides = [1, 1, 1]} : vector<8x8x256xf32> to vector<1x8x256xf32>
    %140 = vector.shape_cast %139 : vector<1x8x256xf32> to vector<8x256xf32>
    %141 = vector.shape_cast %140 : vector<8x256xf32> to vector<1x8x256xf32>
    %142 = vector.broadcast %141 : vector<1x8x256xf32> to vector<3x8x256xf32>
    %143 = arith.mulf %138, %142 : vector<3x8x256xf32>
    %c15_i32_35 = arith.constant 15 : i32
    %144 = tpu.dynamic_rotate %143 by %c15_i32_35 dim 2 : vector<3x8x256xf32>, i32 -> vector<3x8x256xf32>
    %145 = vector.broadcast %55 : vector<1x1x256xf32> to vector<3x8x256xf32>
    %146 = arith.mulf %144, %145 : vector<3x8x256xf32>
    %147 = arith.addf %133, %143 : vector<3x8x256xf32>
    %148 = arith.subf %147, %146 : vector<3x8x256xf32>
    %149 = arith.subf %0, %61 : vector<3x8x256xf32>
    %150 = vector.extract_strided_slice %2 {offsets = [6, 0, 0], sizes = [1, 8, 256], strides = [1, 1, 1]} : vector<8x8x256xf32> to vector<1x8x256xf32>
    %151 = vector.shape_cast %150 : vector<1x8x256xf32> to vector<8x256xf32>
    %152 = vector.broadcast %35 : vector<1x256xf32> to vector<8x256xf32>
    %153 = arith.mulf %151, %152 : vector<8x256xf32>
    %154 = vector.shape_cast %153 : vector<8x256xf32> to vector<1x8x256xf32>
    %155 = vector.broadcast %154 : vector<1x8x256xf32> to vector<3x8x256xf32>
    %156 = arith.mulf %149, %155 : vector<3x8x256xf32>
    %157 = arith.addf %148, %156 : vector<3x8x256xf32>
    %c16_i32_36 = arith.constant 16 : i32
    %158 = tpu.dynamic_rotate %156 by %c16_i32_36 dim 2 : vector<3x8x256xf32>, i32 -> vector<3x8x256xf32>
    %159 = arith.subf %157, %158 : vector<3x8x256xf32>
    %c255_i32_37 = arith.constant 255 : i32
    %160 = tpu.dynamic_rotate %67 by %c255_i32_37 dim 2 : vector<3x8x256xf32>, i32 -> vector<3x8x256xf32>
    %161 = vector.shape_cast %23 : vector<1x1x256xi1> to vector<1x1x256xi1>
    %162 = vector.broadcast %161 : vector<1x1x256xi1> to vector<3x8x256xi1>
    %163 = arith.select %162, %67, %160 : vector<3x8x256xi1>, vector<3x8x256xf32>
    %164 = arith.subf %0, %163 : vector<3x8x256xf32>
    %165 = vector.extract_strided_slice %2 {offsets = [7, 0, 0], sizes = [1, 8, 256], strides = [1, 1, 1]} : vector<8x8x256xf32> to vector<1x8x256xf32>
    %166 = vector.shape_cast %165 : vector<1x8x256xf32> to vector<8x256xf32>
    %167 = vector.shape_cast %166 : vector<8x256xf32> to vector<1x8x256xf32>
    %168 = vector.broadcast %167 : vector<1x8x256xf32> to vector<3x8x256xf32>
    %169 = arith.mulf %164, %168 : vector<3x8x256xf32>
    %c17_i32 = arith.constant 17 : i32
    %170 = tpu.dynamic_rotate %169 by %c17_i32 dim 2 : vector<3x8x256xf32>, i32 -> vector<3x8x256xf32>
    %171 = vector.broadcast %51 : vector<1x1x256xf32> to vector<3x8x256xf32>
    %172 = arith.mulf %170, %171 : vector<3x8x256xf32>
    %173 = arith.addf %159, %169 : vector<3x8x256xf32>
    %174 = arith.subf %173, %172 : vector<3x8x256xf32>
    %c0_38 = arith.constant 0 : index
    %c0_39 = arith.constant 0 : index
    %c0_40 = arith.constant 0 : index
    %175 = vector.load %arg3[%c0_38, %c0_39, %c0_40] : memref<3x8x256xf32, #tpu.memory_space<vmem>>, vector<3x8x256xf32>
    tpu.vector_store %arg3[%c0_38, %c0_39, %c0_40], %174 {strides = array<i32>} : memref<3x8x256xf32, #tpu.memory_space<vmem>>, vector<3x8x256xf32>,
    return
  }
  func.func @transform_0(%arg0: i32) -> (i32, i32, i32) {
    %c0_i32 = arith.constant 0 : i32
    %c0_i32_0 = arith.constant 0 : i32
    %c0_i32_1 = arith.constant 0 : i32
    return %c0_i32, %arg0, %c0_i32_0 : i32, i32, i32
  }
  func.func @transform_1(%arg0: i32) -> (i32, i32, i32) {
    %c0_i32 = arith.constant 0 : i32
    %c0_i32_0 = arith.constant 0 : i32
    %c0_i32_1 = arith.constant 0 : i32
    return %c0_i32, %arg0, %c0_i32_0 : i32, i32, i32
  }
  func.func @transform_2(%arg0: i32) -> (i32, i32, i32) {
    %c0_i32 = arith.constant 0 : i32
    %c0_i32_0 = arith.constant 0 : i32
    %c0_i32_1 = arith.constant 0 : i32
    return %c0_i32, %arg0, %c0_i32_0 : i32, i32, i32
  }
}

</mosaic_0001>

<bundles_post_ra>
// kernel: tpu_custom_call.1
= control target key start
LH: loop header
LB: loop body
LE: loop exit
PB: predicated region body
PF: predicated region fallthrough
CT: control target
= control target key end

     0   :  { %7 = vsyncpa [#allocation3], 0  ;;  %s1834_s0 = inlined_call_operand.hbm [shape: f32[3,8,256], index: 0, kind: input, shape index: {}]   ;;  %s1835_s1 = inlined_call_operand.hbm [shape: f32[8,8,256], index: 1, kind: input, shape index: {}]   ;;  %s1836_s2 = inlined_call_operand.hbm [shape: f32[3,8,256], index: 2, kind: output, shape index: {}]  }
   0x1   :  { %8 = vsyncpa [#allocation6], 0 }
   0x2   :  { %9 = vsyncpa [#allocation4], 0  ;;  %s14_s11 = sshll.u32 %s1834_s0, 4  ;;  %s829_s12 = smov [#allocation2]   ;;  %s15_s11 = int_to_ptr.hbm [resolvable:$true] %s14_s11 }
   0x3   :  { %s16_s13 = sshll.u32 %s829_s12, 4  ;;  %s27_s16 = sshll.u32 %s1835_s1, 4  ;;  %s17_s13 = int_to_ptr.vmem [resolvable:$true] %s16_s13  ;;  %s28_s16 = int_to_ptr.hbm [resolvable:$true] %s27_s16 }
   0x4   :  { %s830_s17 = smov 256   ;;  %s831_s18 = smov 16  }
   0x5   :  { %22 = dma.hbm_to_vmem [thread:$0]  %s15_s11, 768, %s17_s13, [#allocation3], %s830_s17, %s830_s17, %s831_s18  }
   0x6   :  { %s832_s19 = smov [#allocation5]  }
   0x7   :  { %s29_s20 = sshll.u32 %s832_s19, 4  ;;  %s30_s20 = int_to_ptr.vmem [resolvable:$true] %s29_s20 }
   0x8   :  { %35 = dma.hbm_to_vmem [thread:$0]  %s28_s16, 2048, %s30_s20, [#allocation6], %s830_s17, %s830_s17, %s831_s18  }
   0x9   :  { %823 = dma.done.wait [#allocation3], 768  }
   0xa   :  { %824 = vsyncadd [#allocation3], 4294966528 }
   0xb   :  { %825 = dma.done.wait [#allocation6], 2048  }
   0xc   :  { %826 = vsyncadd [#allocation6], 4294965248  ;;  %v869_v0 = vld [vmem:[#allocation2 + $0x20] sm:$0xff]  ;;  %v877_v2 = vld [vmem:[#allocation2 + $0x18] sm:$0xff]  ;;  %s833_s0 = smov 112   ;;  %s834_s1 = smov 1   ;;  %v82_v8 = vlaneseq }
   0xd   :  { %v871_v1 = vld [vmem:[#allocation2] sm:$0xff]  ;;  %145 = vrot.lane.b32.xlu1 %v869_v0, %s831_s18  ;;  %149 = vrot.lane.b32.xlu2 %v877_v2, %s831_s18  ;;  %v881_v3 = vld [vmem:[#allocation2 + $0x8] sm:$0xff]  ;;  %v883_v4 = vld [vmem:[#allocation2 + $0x10] sm:$0xff]  ;;  %s835_s21 = smov 127   ;;  %v1838_v33 = vmov 1.0   ;;  %v1870_v46 = vmov 0 }
   0xe   :  { %141 = vrot.lane.b32.xlu0 %v871_v1, %s831_s18  ;;  %v885_v5 = vld [vmem:[#allocation2 + $0x28] sm:$0xff]  ;;  %v931_v10 = vand.u32 127, %v82_v8  ;;  %v52_v27 = vld [vmem:[#allocation5 + $0x10] sm:$0xff]  ;;  %s837_s22 = smov 111   ;;  %s838_s23 = smov 113  }
   0xf   :  { %v68_v32 = vmul.f32 %v52_v27, %v52_v27  ;;  %v53_v42 = vld [vmem:[#allocation5 + $0x18] sm:$0xff]  ;;  %v56_v43 = vld [vmem:[#allocation5 + $0x30] sm:$0xff]  ;;  %s839_s24 = smov 15   ;;  %s840_s25 = smov 17  }
  0x10   :  { %vm113_vm0 = vcmp.lt.s32.totalorder %v931_v10, 16  ;;  %vm171_vm1 = vcmp.lt.s32.totalorder %v931_v10, 112  ;;  %v89_v40 = vand.u32 15, %v931_v10  ;;  %vm210_vm2 = vcmp.lt.s32.totalorder %v931_v10, 1  ;;  %s841_s26 = smov [#allocation7]   ;;  %s724_s30 = sshll.u32 %s1836_s2, 4  ;;  %s725_s30 = int_to_ptr.hbm [resolvable:$true] %s724_s30 }
  0x11   :  { %v117_v34 = vsel %vm113_vm0, 0.0, %v1838_v33  ;;  %v69_v48 = vmul.f32 %v53_v42, %v53_v42  ;;  %v72_v49 = vmul.f32 %v56_v43, %v56_v43  ;;  %v1038_v55 = vadd.s32 128, %v931_v10  ;;  %s722_s27 = sshll.u32 %s841_s26, 4  ;;  %s723_s27 = int_to_ptr.vmem [resolvable:$true] %s722_s27 }
  0x12   :  { %v282_v36 = vmul.f32 %v117_v34, %v68_v32  ;;  %vm1021_vm3 = vcmp.eq.s32.totalorder %v89_v40, 0  ;;  %v58_v34 = vld [vmem:[#allocation5 + $0x40] sm:$0xff]  ;;  %vm1086_vm5 = vcmp.eq.s32.totalorder %v89_v40, 15  ;;  %vm332_vm6 = vcmp.lt.s32.totalorder %v931_v10, 127 }
  0x13   :  { %v1871_v46 = vsel %vm1021_vm3, 4294967295, %v1870_v46  ;;  %v1031_v51 = vsel %vm1021_vm3, 0.0, %v1838_v33  ;;  %v96_v60 = vand.u32 15, %v1038_v55  ;;  %v1102_v40 = vsel %vm1086_vm5, 0.0, %v1838_v33  ;;  %vm133_vm13 = vmor %vm113_vm0, %vm1086_vm5 }
  0x14   :  { %1872 = vst [vmem:[#allocation11_spill] sm:$0xff] %v1871_v46  ;;  %v422_v58 = vmul.f32 %v1031_v51, %v72_v49  ;;  %vm116_vm8 = vcmp.ge.s32.totalorder %v1038_v55, 240  ;;  %vm251_vm10 = vcmp.lt.s32.totalorder %v931_v10, 111  ;;  %vm373_vm12 = vcmp.lt.s32.totalorder %v931_v10, 113  ;;  %vm129_vm15 = vmor %vm113_vm0, %vm1021_vm3 }
  0x15   :  { %147 = vrot.lane.b32.xlu1 %v881_v3, %s831_s18  ;;  %151 = vrot.lane.b32.xlu2 %v885_v5, %s831_s18  ;;  %vm1059_vm4 = vcmp.eq.s32.totalorder %v96_v60, 0  ;;  %vm1144_vm7 = vcmp.eq.s32.totalorder %v96_v60, 15  ;;  %vm570_vm14 = vcmp.lt.s32.totalorder %v931_v10, 15 }
  0x16   :  { %143 = vrot.lane.b32.xlu0 %v883_v4, %s831_s18  ;;  %vm138_vm9 = vmor %vm116_vm8, %vm1144_vm7 }
  0x17   :  { %vm126_vm11 = vmor %vm116_vm8, %vm1059_vm4 }
  0x1d   :  { %161 = vrot.lane.b32.xlu1 %v883_v4, %s833_s0  ;;  %163 = vrot.lane.b32.xlu2 %v869_v0, %s833_s0 }
  0x1e   :  { %159 = vrot.lane.b32.xlu0 %v871_v1, %s833_s0 }
  0x25   :  { %167 = vrot.lane.b32.xlu1 %v877_v2, %s833_s0  ;;  %169 = vrot.lane.b32.xlu2 %v885_v5, %s833_s0 }
  0x26   :  { %165 = vrot.lane.b32.xlu0 %v881_v3, %s833_s0 }
  0x2d   :  { %400 = vrot.lane.b32.xlu1 %v883_v4, %s834_s1  ;;  %402 = vrot.lane.b32.xlu2 %v869_v0, %s834_s1 }
  0x2e   :  { %398 = vrot.lane.b32.xlu0 %v871_v1, %s834_s1 }
  0x35   :  { %406 = vrot.lane.b32.xlu1 %v877_v2, %s834_s1  ;;  %408 = vrot.lane.b32.xlu2 %v885_v5, %s834_s1 }
  0x36   :  { %404 = vrot.lane.b32.xlu0 %v881_v3, %s834_s1 }
  0x3d   :  { %462 = vrot.lane.b32.xlu1 %v883_v4, %s835_s21  ;;  %464 = vrot.lane.b32.xlu2 %v869_v0, %s835_s21 }
  0x3e   :  { %460 = vrot.lane.b32.xlu0 %v871_v1, %s835_s21 }
  0x45   :  { %468 = vrot.lane.b32.xlu1 %v877_v2, %s835_s21  ;;  %470 = vrot.lane.b32.xlu2 %v885_v5, %s835_s21 }
  0x46   :  { %466 = vrot.lane.b32.xlu0 %v881_v3, %s835_s21 }
  0x67   :  { %v150_v6 = vpop.permute.xlu2 %149 }
  0x6f   :  { %v152_v7 = vpop.permute.xlu2 %151 }
  0x77   :  { %v929_v9 = vpop.permute.xlu2 %163 }
  0x7f   :  { %v146_v11 = vpop.permute.xlu1 %145  ;;  %v939_v14 = vpop.permute.xlu2 %169 }
  0x80   :  { %v142_v12 = vpop.permute.xlu0 %141  ;;  %v936_v13 = vsel %vm113_vm0, %v146_v11, %v152_v7  ;;  %v947_v15 = vsel %vm171_vm1, %v939_v14, %v929_v9  ;;  %v158_v20 = vsel %vm113_vm0, %v152_v7, %v146_v11 }
  0x81   :  { %208 = vrot.lane.b32.xlu2 %v936_v13, %s834_s1  ;;  %v972_v23 = vsel %vm113_vm0, %v869_v0, %v158_v20  ;;  %v280_v35 = vsub.f32 %v869_v0, %v158_v20  ;;  %v281_v45 = vsub.f32 %v885_v5, %v936_v13 }
  0x83   :  { %v1008_v37 = vmul.f32 %v282_v36, %v280_v35  ;;  %v1033_v52 = vmul.f32 %v281_v45, %v69_v48 }
  0x87   :  { %v148_v16 = vpop.permute.xlu1 %147  ;;  %v403_v25 = vpop.permute.xlu2 %402 }
  0x88   :  { %v144_v17 = vpop.permute.xlu0 %143  ;;  %v951_v18 = vsel %vm113_vm0, %v142_v12, %v148_v16  ;;  %v156_v24 = vsel %vm113_vm0, %v148_v16, %v142_v12 }
  0x89   :  { %v955_v19 = vsel %vm113_vm0, %v144_v17, %v150_v6  ;;  %330 = vrot.lane.b32.xlu2 %v936_v13, %s835_s21  ;;  %204 = vrot.lane.b32.xlu0 %v951_v18, %s834_s1  ;;  %v157_v26 = vsel %vm113_vm0, %v150_v6, %v144_v17  ;;  %v991_v30 = vsel %vm113_vm0, %v871_v1, %v156_v24  ;;  %v57_v6 = vld [vmem:[#allocation5 + $0x38] sm:$0xff] }
  0x8a   :  { %206 = vrot.lane.b32.xlu1 %v955_v19, %s834_s1  ;;  %v1000_v31 = vsel %vm113_vm0, %v883_v4, %v157_v26  ;;  %v276_v44 = vsub.f32 %v871_v1, %v156_v24  ;;  %v278_v47 = vsub.f32 %v883_v4, %v157_v26  ;;  %v277_v62 = vsub.f32 %v881_v3, %v951_v18 }
  0x8b   :  { %v279_v63 = vsub.f32 %v877_v2, %v955_v19  ;;  %v73_v17 = vmul.f32 %v57_v6, %v57_v6  ;;  %v1074_v24 = vsel %vm1059_vm4, 0.0, %v1838_v33 }
  0x8c   :  { %v1035_v53 = vmul.f32 %v282_v36, %v276_v44  ;;  %v1040_v56 = vmul.f32 %v282_v36, %v278_v47  ;;  %v1067_v16 = vmul.f32 %v277_v62, %v69_v48  ;;  %1875 = vst [vmem:[#allocation12_spill] sm:$0xff] %v1074_v24  ;;  %v74_v44 = vmul.f32 %v58_v34, %v58_v34 }
  0x8d   :  { %v1069_v20 = vmul.f32 %v279_v63, %v69_v48  ;;  %v423_v36 = vmul.f32 %v1074_v24, %v73_v17  ;;  %v50_v24 = vld [vmem:[#allocation5] sm:$0xff] }
  0x8f   :  { %v965_v21 = vpop.permute.xlu1 %161  ;;  %v409_v38 = vpop.permute.xlu2 %408 }
  0x90   :  { %v967_v22 = vpop.permute.xlu0 %159  ;;  %v415_v50 = vsel %vm210_vm2, %v409_v38, %v403_v25  ;;  %v412_v11 = vsel %vm210_vm2, %v403_v25, %v409_v38 }
  0x91   :  { %202 = vrot.lane.b32.xlu2 %v972_v23, %s834_s1  ;;  %326 = vrot.lane.b32.xlu0 %v951_v18, %s835_s21  ;;  %v420_v57 = vsub.f32 %v869_v0, %v415_v50  ;;  %v421_v26 = vsub.f32 %v885_v5, %v412_v11 }
  0x92   :  { %328 = vrot.lane.b32.xlu1 %v955_v19, %s835_s21 }
  0x93   :  { %v1057_v7 = vmul.f32 %v422_v58, %v420_v57  ;;  %v1095_v45 = vmul.f32 %v423_v36, %v421_v26  ;;  %v484_v57 = vmul.f32 %v1102_v40, %v74_v44 }
  0x97   :  { %v984_v28 = vpop.permute.xlu1 %167  ;;  %v1048_v59 = vpop.permute.xlu2 %464 }
  0x98   :  { %v986_v29 = vpop.permute.xlu0 %165 }
  0x99   :  { %324 = vrot.lane.b32.xlu2 %v972_v23, %s835_s21  ;;  %198 = vrot.lane.b32.xlu0 %v991_v30, %s834_s1 }
  0x9a   :  { %200 = vrot.lane.b32.xlu1 %v1000_v31, %s834_s1 }
  0x9f   :  { %v401_v41 = vpop.permute.xlu1 %400  ;;  %v471_v38 = vpop.permute.xlu2 %470 }
  0xa0   :  { %v399_v39 = vpop.permute.xlu0 %398  ;;  %v474_v49 = vsel %vm332_vm6, %v1048_v59, %v471_v38 }
  0xa1   :  { %300 = vrot.lane.b32.xlu2 %v1008_v37, %s833_s0  ;;  %320 = vrot.lane.b32.xlu0 %v991_v30, %s835_s21 }
  0xa2   :  { %322 = vrot.lane.b32.xlu1 %v1000_v31, %s835_s21 }
  0xa7   :  { %v407_v61 = vpop.permute.xlu1 %406 }
  0xa8   :  { %v405_v54 = vpop.permute.xlu0 %404  ;;  %v414_v27 = vsel %vm210_vm2, %v407_v61, %v401_v41  ;;  %v411_v62 = vsel %vm210_vm2, %v401_v41, %v407_v61 }
  0xa9   :  { %306 = vrot.lane.b32.xlu2 %v1033_v52, %s833_s0  ;;  %296 = vrot.lane.b32.xlu0 %v1035_v53, %s833_s0  ;;  %v413_v12 = vsel %vm210_vm2, %v405_v54, %v399_v39  ;;  %v418_v42 = vsub.f32 %v883_v4, %v414_v27  ;;  %v410_v48 = vsel %vm210_vm2, %v399_v39, %v405_v54 }
  0xaa   :  { %298 = vrot.lane.b32.xlu1 %v1040_v56, %s833_s0  ;;  %v416_v25 = vsub.f32 %v871_v1, %v413_v12  ;;  %v417_v63 = vsub.f32 %v881_v3, %v410_v48  ;;  %v482_v39 = vsub.f32 %v869_v0, %v474_v49  ;;  %v1154_v48 = vsel %vm171_vm1, %v965_v21, %v984_v28 }
  0xab   :  { %v1109_v50 = vmul.f32 %v422_v58, %v418_v42 }
  0xac   :  { %v1097_v47 = vmul.f32 %v422_v58, %v416_v25  ;;  %v419_v58 = vsub.f32 %v877_v2, %v411_v62  ;;  %v1123_v6 = vmul.f32 %v484_v57, %v482_v39  ;;  %v1125_v11 = vmul.f32 %v423_v36, %v417_v63  ;;  %v59_v25 = vld [vmem:[#allocation5 + $0x48] sm:$0xff] }
  0xad   :  { %1879 = vst [vmem:[#allocation14_spill] sm:$0xff] %v1109_v50  ;;  %v75_v44 = vmul.f32 %v59_v25, %v59_v25  ;;  %v1161_v62 = vsel %vm1144_vm7, 0.0, %v1838_v33 }
  0xae   :  { %1878 = vst [vmem:[#allocation13_spill] sm:$0xff] %v1097_v47  ;;  %v1129_v12 = vmul.f32 %v423_v36, %v419_v58 }
  0xaf   :  { %v1093_v43 = vpop.permute.xlu1 %462  ;;  %1880 = vst [vmem:[#allocation15_spill] sm:$0xff] %v1125_v11 }
  0xb0   :  { %v461_v32 = vpop.permute.xlu0 %460  ;;  %1881 = vst [vmem:[#allocation16_spill] sm:$0xff] %v1129_v12 }
  0xb1   :  { %440 = vrot.lane.b32.xlu2 %v1057_v7, %s835_s21  ;;  %302 = vrot.lane.b32.xlu0 %v1067_v16, %s833_s0  ;;  %1886 = vst [vmem:[#allocation19_spill] sm:$0xff] %v1161_v62 }
  0xb2   :  { %304 = vrot.lane.b32.xlu1 %v1069_v20, %s833_s0 }
  0xb7   :  { %v469_v41 = vpop.permute.xlu1 %468 }
  0xb8   :  { %v467_v54 = vpop.permute.xlu0 %466  ;;  %v473_v17 = vsel %vm332_vm6, %v1093_v43, %v469_v41 }
  0xb9   :  { %446 = vrot.lane.b32.xlu2 %v1095_v45, %s835_s21  ;;  %436 = vrot.lane.b32.xlu0 %v1097_v47, %s835_s21  ;;  %v472_v61 = vsel %vm332_vm6, %v461_v32, %v467_v54  ;;  %v480_v27 = vsub.f32 %v883_v4, %v473_v17  ;;  %v475_v42 = vsel %vm332_vm6, %v467_v54, %v461_v32  ;;  %v62_v17 = vld [vmem:[#allocation5 + $0x60] sm:$0xff]  ;;  %v61_v47 = vld [vmem:[#allocation5 + $0x58] sm:$0xff] }
  0xba   :  { %438 = vrot.lane.b32.xlu1 %v1109_v50, %s835_s21  ;;  %v478_v26 = vsub.f32 %v871_v1, %v472_v61  ;;  %v479_v60 = vsub.f32 %v881_v3, %v475_v42  ;;  %v485_v32 = vmul.f32 %v1161_v62, %v75_v44  ;;  %v1190_v54 = vsel %vm171_vm1, %v967_v22, %v986_v29  ;;  %v63_v44 = vld [vmem:[#allocation5 + $0x68] sm:$0xff] }
  0xbb   :  { %v1156_v49 = vmul.f32 %v484_v57, %v480_v27  ;;  %v78_v42 = vmul.f32 %v62_v17, %v62_v17  ;;  %v597_v17 = vsub.f32 %v883_v4, %v1154_v48  ;;  %v66_v62 = vmul.f32 %v50_v24, %v50_v24  ;;  %v55_v50 = vld [vmem:[#allocation5 + $0x28] sm:$0xff] }
  0xbc   :  { %v1142_v34 = vmul.f32 %v484_v57, %v478_v26  ;;  %v1175_v57 = vsel %vm171_vm1, %v984_v28, %v965_v21  ;;  %v1178_v63 = vmul.f32 %v485_v32, %v479_v60  ;;  %v175_v21 = vsel %vm171_vm1, %v986_v29, %v967_v22 }
  0xbd   :  { %1885 = vst [vmem:[#allocation18_spill] sm:$0xff] %v1156_v49  ;;  %v1184_v39 = vsel %vm116_vm8, %v877_v2, %v1175_v57  ;;  %v1206_v28 = vsel %vm171_vm1, %v929_v9, %v939_v14  ;;  %v1213_v58 = vsel %vm116_vm8, %v881_v3, %v175_v21  ;;  %v477_v9 = vsel %vm332_vm6, %v471_v38, %v1048_v59 }
  0xbe   :  { %1882 = vst [vmem:[#allocation17_spill] sm:$0xff] %v1142_v34  ;;  %v1226_v14 = vsel %vm116_vm8, %v885_v5, %v947_v15  ;;  %v483_v29 = vsub.f32 %v885_v5, %v477_v9  ;;  %v476_v38 = vsel %vm332_vm6, %v469_v41, %v1093_v43  ;;  %v599_v27 = vsub.f32 %v869_v0, %v1206_v28 }
  0xbf   :  { %1887 = vst [vmem:[#allocation20_spill] sm:$0xff] %v1178_v63  ;;  %v481_v25 = vsub.f32 %v877_v2, %v476_v38  ;;  %v79_v41 = vmul.f32 %v63_v44, %v63_v44  ;;  %v120_v9 = vsel %vm116_vm8, 0.0, %v1838_v33 }
  0xc0   :  { %v1237_v59 = vmul.f32 %v485_v32, %v483_v29  ;;  %v1251_v60 = vmul.f32 %v599_v27, %v78_v42  ;;  %v600_v29 = vsub.f32 %v885_v5, %v947_v15  ;;  %v1279_v15 = vmul.f32 %v597_v17, %v78_v42 }
  0xc1   :  { %502 = vrot.lane.b32.xlu2 %v1123_v6, %s834_s1  ;;  %442 = vrot.lane.b32.xlu0 %v1125_v11, %s835_s21  ;;  %v1253_v43 = vmul.f32 %v485_v32, %v481_v25  ;;  %v595_v32 = vsub.f32 %v871_v1, %v1190_v54  ;;  %v602_v25 = vmul.f32 %v120_v9, %v79_v41 }
  0xc2   :  { %444 = vrot.lane.b32.xlu1 %v1129_v12, %s835_s21  ;;  %1888 = vst [vmem:[#allocation21_spill] sm:$0xff] %v1251_v60  ;;  %v596_v41 = vsub.f32 %v881_v3, %v175_v21 }
  0xc3   :  { %1889 = vst [vmem:[#allocation22_spill] sm:$0xff] %v1253_v43  ;;  %v1272_v44 = vmul.f32 %v602_v25, %v600_v29 }
  0xc4   :  { %1892 = vst [vmem:[#allocation25_spill] sm:$0xff] %v1279_v15 }
  0xc5   :  { %1890 = vst [vmem:[#allocation23_spill] sm:$0xff] %v1272_v44 }
  0xc9   :  { %524 = vrot.lane.b32.xlu2 %v1154_v48, %s834_s1  ;;  %498 = vrot.lane.b32.xlu0 %v1142_v34, %s834_s1 }
  0xca   :  { %500 = vrot.lane.b32.xlu1 %v1156_v49, %s834_s1 }
  0xd1   :  { %530 = vrot.lane.b32.xlu2 %v1184_v39, %s834_s1  ;;  %504 = vrot.lane.b32.xlu0 %v1178_v63, %s834_s1 }
  0xd2   :  { %522 = vrot.lane.b32.xlu1 %v1190_v54, %s834_s1 }
  0xd9   :  { %641 = vrot.lane.b32.xlu2 %v1154_v48, %s835_s21  ;;  %526 = vrot.lane.b32.xlu0 %v1206_v28, %s834_s1 }
  0xda   :  { %528 = vrot.lane.b32.xlu1 %v1213_v58, %s834_s1 }
  0xdb   :  { %v209_v22 = vpop.permute.xlu2 %208 }
  0xe1   :  { %647 = vrot.lane.b32.xlu2 %v1184_v39, %s835_s21  ;;  %532 = vrot.lane.b32.xlu0 %v1226_v14, %s834_s1 }
  0xe2   :  { %639 = vrot.lane.b32.xlu1 %v1190_v54, %s835_s21 }
  0xe3   :  { %v1235_v61 = vpop.permute.xlu2 %330 }
  0xe9   :  { %508 = vrot.lane.b32.xlu2 %v1237_v59, %s834_s1  ;;  %643 = vrot.lane.b32.xlu0 %v1206_v28, %s835_s21 }
  0xea   :  { %645 = vrot.lane.b32.xlu1 %v1213_v58, %s835_s21 }
  0xeb   :  { %v203_v26 = vpop.permute.xlu2 %202 }
  0xec   :  { %v216_v27 = vsel %vm210_vm2, %v209_v22, %v203_v26 }
  0xed   :  { %v225_v33 = vsel %vm1021_vm3, %v972_v23, %v216_v27  ;;  %v213_v27 = vsel %vm210_vm2, %v203_v26, %v209_v22 }
  0xee   :  { %v231_v9 = vsub.f32 %v869_v0, %v225_v33  ;;  %v226_v21 = vsel %vm1059_vm4, %v936_v13, %v213_v27  ;;  %v51_v33 = vld [vmem:[#allocation5 + $0x8] sm:$0xff] }
  0xef   :  { %v232_v24 = vsub.f32 %v885_v5, %v226_v21  ;;  %v67_v26 = vmul.f32 %v51_v33, %v51_v33  ;;  %v54_v33 = vld [vmem:[#allocation5 + $0x20] sm:$0xff] }
  0xf1   :  { %619 = vrot.lane.b32.xlu2 %v1251_v60, %s831_s18  ;;  %649 = vrot.lane.b32.xlu0 %v1226_v14, %s835_s21  ;;  %v1274_v60 = vmul.f32 %v595_v32, %v78_v42  ;;  %v598_v42 = vsub.f32 %v877_v2, %v1175_v57  ;;  %v1320_v27 = vmul.f32 %v232_v24, %v67_v26 }
  0xf2   :  { %506 = vrot.lane.b32.xlu1 %v1253_v43, %s834_s1 }
  0xf3   :  { %v325_v38 = vpop.permute.xlu2 %324  ;;  %1891 = vst [vmem:[#allocation24_spill] sm:$0xff] %v1274_v60 }
  0xf4   :  { %v338_v24 = vsel %vm332_vm6, %v1235_v61, %v325_v38 }
  0xf9   :  { %625 = vrot.lane.b32.xlu2 %v1272_v44, %s831_s18  ;;  %615 = vrot.lane.b32.xlu0 %v1274_v60, %s831_s18  ;;  %v1293_v44 = vmul.f32 %v231_v9, %v66_v62  ;;  %v1295_v60 = vmul.f32 %v602_v25, %v596_v41 }
  0xfa   :  { %617 = vrot.lane.b32.xlu1 %v1279_v15, %s831_s18  ;;  %v1300_v15 = vmul.f32 %v602_v25, %v598_v42  ;;  %v335_v42 = vsel %vm332_vm6, %v325_v38, %v1235_v61 }
  0xfb   :  { %v301_v29 = vpop.permute.xlu2 %300  ;;  %v205_v32 = vpop.permute.xlu0 %204  ;;  %1893 = vst [vmem:[#allocation26_spill] sm:$0xff] %v1295_v60  ;;  %v347_v21 = vsel %vm1086_vm5, %v972_v23, %v335_v42 }
  0xfc   :  { %v207_v17 = vpop.permute.xlu1 %206  ;;  %1894 = vst [vmem:[#allocation27_spill] sm:$0xff] %v1300_v15 }
 0x101   :  { %243 = vrot.lane.b32.xlu2 %v1293_v44, %s837_s22  ;;  %621 = vrot.lane.b32.xlu0 %v1295_v60, %s831_s18  ;;  %v353_v60 = vsub.f32 %v869_v0, %v347_v21 }
 0x102   :  { %623 = vrot.lane.b32.xlu1 %v1300_v15, %s831_s18 }
 0x103   :  { %v307_v57 = vpop.permute.xlu2 %306  ;;  %v327_v22 = vpop.permute.xlu0 %326 }
 0x104   :  { %v1311_v25 = vsel %vm171_vm1, %v301_v29, %v307_v57  ;;  %v1315_v41 = vsel %vm171_vm1, %v307_v57, %v301_v29  ;;  %v329_v9 = vpop.permute.xlu1 %328  ;;  %v70_v57 = vmul.f32 %v54_v33, %v54_v33 }
 0x106   :  { %v1347_v38 = vmul.f32 %v353_v60, %v70_v57 }
 0x109   :  { %249 = vrot.lane.b32.xlu2 %v1320_v27, %s837_s22 }
 0x10b   :  { %v441_v15 = vpop.permute.xlu2 %440  ;;  %v199_v29 = vpop.permute.xlu0 %198 }
 0x10c   :  { %v201_v43 = vpop.permute.xlu1 %200  ;;  %v214_v49 = vsel %vm210_vm2, %v205_v32, %v199_v29  ;;  %v211_v33 = vsel %vm210_vm2, %v199_v29, %v205_v32  ;;  %v71_v29 = vmul.f32 %v55_v50, %v55_v50 }
 0x10d   :  { %v215_v23 = vsel %vm210_vm2, %v207_v17, %v201_v43  ;;  %v221_v42 = vsel %vm1021_vm3, %v991_v30, %v214_v49  ;;  %v212_v34 = vsel %vm210_vm2, %v201_v43, %v207_v17  ;;  %v348_v49 = vsel %vm1144_vm7, %v936_v13, %v338_v24 }
 0x10e   :  { %v223_v21 = vsel %vm1021_vm3, %v1000_v31, %v215_v23  ;;  %v227_v63 = vsub.f32 %v871_v1, %v221_v42  ;;  %v222_v32 = vsel %vm1059_vm4, %v951_v18, %v211_v33  ;;  %v224_v60 = vsel %vm1059_vm4, %v955_v19, %v212_v34 }
 0x10f   :  { %v229_v61 = vsub.f32 %v883_v4, %v223_v21  ;;  %v354_v13 = vsub.f32 %v885_v5, %v348_v49  ;;  %v228_v24 = vsub.f32 %v881_v3, %v222_v32  ;;  %v230_v42 = vsub.f32 %v877_v2, %v224_v60 }
 0x110   :  { %v1352_v12 = vmul.f32 %v227_v63, %v66_v62 }
 0x111   :  { %365 = vrot.lane.b32.xlu2 %v1347_v38, %s838_s23  ;;  %v1359_v43 = vmul.f32 %v229_v61, %v66_v62  ;;  %v1383_v50 = vmul.f32 %v354_v13, %v71_v29  ;;  %v1385_v61 = vmul.f32 %v228_v24, %v67_v26 }
 0x112   :  { %239 = vrot.lane.b32.xlu0 %v1352_v12, %s837_s22 }
 0x113   :  { %241 = vrot.lane.b32.xlu1 %v1359_v43, %s837_s22  ;;  %v447_v63 = vpop.permute.xlu2 %446  ;;  %v321_v17 = vpop.permute.xlu0 %320 }
 0x114   :  { %v1372_v62 = vsel %vm332_vm6, %v441_v15, %v447_v63  ;;  %v1376_v34 = vsel %vm332_vm6, %v447_v63, %v441_v15  ;;  %v323_v23 = vpop.permute.xlu1 %322  ;;  %v333_v21 = vsel %vm332_vm6, %v321_v17, %v327_v22  ;;  %v1392_v15 = vmul.f32 %v230_v42, %v67_v26 }
 0x115   :  { %v334_v33 = vsel %vm332_vm6, %v323_v23, %v329_v9  ;;  %v343_v49 = vsel %vm1086_vm5, %v991_v30, %v333_v21  ;;  %v336_v26 = vsel %vm332_vm6, %v327_v22, %v321_v17 }
 0x116   :  { %v345_v32 = vsel %vm1086_vm5, %v1000_v31, %v334_v33  ;;  %v349_v30 = vsub.f32 %v871_v1, %v343_v49  ;;  %v337_v31 = vsel %vm332_vm6, %v329_v9, %v323_v23  ;;  %v344_v21 = vsel %vm1144_vm7, %v951_v18, %v336_v26 }
 0x117   :  { %v351_v24 = vsub.f32 %v883_v4, %v345_v32  ;;  %v346_v49 = vsel %vm1144_vm7, %v955_v19, %v337_v31  ;;  %v350_v17 = vsub.f32 %v881_v3, %v344_v21  ;;  %v60_v31 = vld [vmem:[#allocation5 + $0x50] sm:$0xff] }
 0x118   :  { %v1409_v42 = vmul.f32 %v349_v30, %v70_v57  ;;  %v352_v19 = vsub.f32 %v877_v2, %v346_v49  ;;  %v1451_v11 = vmul.f32 %v60_v31, %v60_v31 }
 0x119   :  { %371 = vrot.lane.b32.xlu2 %v1383_v50, %s838_s23  ;;  %v1414_v33 = vmul.f32 %v351_v24, %v70_v57  ;;  %v1441_v24 = vmul.f32 %v350_v17, %v71_v29 }
 0x11a   :  { %245 = vrot.lane.b32.xlu0 %v1385_v61, %s837_s22  ;;  %v1443_v26 = vmul.f32 %v352_v19, %v71_v29 }
 0x11b   :  { %247 = vrot.lane.b32.xlu1 %v1392_v15, %s837_s22  ;;  %v1401_v60 = vpop.permute.xlu2 %502  ;;  %v297_v13 = vpop.permute.xlu0 %296  ;;  %1895 = vst [vmem:[#allocation28_spill] sm:$0xff] %v1414_v33 }
 0x11c   :  { %v299_v63 = vpop.permute.xlu1 %298  ;;  %1896 = vst [vmem:[#allocation29_spill] sm:$0xff] %v1441_v24 }
 0x11d   :  { %1897 = vst [vmem:[#allocation30_spill] sm:$0xff] %v1443_v26 }
 0x122   :  { %361 = vrot.lane.b32.xlu0 %v1409_v42, %s838_s23 }
 0x123   :  { %363 = vrot.lane.b32.xlu1 %v1414_v33, %s838_s23  ;;  %v525_v22 = vpop.permute.xlu2 %524  ;;  %v303_v9 = vpop.permute.xlu0 %302 }
 0x124   :  { %v305_v23 = vpop.permute.xlu1 %304  ;;  %v1426_v18 = vsel %vm171_vm1, %v297_v13, %v303_v9  ;;  %v1430_v57 = vsel %vm171_vm1, %v303_v9, %v297_v13 }
 0x125   :  { %v1435_v32 = vsel %vm171_vm1, %v299_v63, %v305_v23  ;;  %v1439_v30 = vsel %vm171_vm1, %v305_v23, %v299_v63  ;;  %vm687_vm1 = vcmp.lt.s32.totalorder %v931_v10, 17 }
 0x12a   :  { %367 = vrot.lane.b32.xlu0 %v1441_v24, %s838_s23  ;;  %v64_v24 = vld [vmem:[#allocation5 + $0x70] sm:$0xff] }
 0x12b   :  { %369 = vrot.lane.b32.xlu1 %v1443_v26, %s838_s23  ;;  %v531_v13 = vpop.permute.xlu2 %530  ;;  %v437_v21 = vpop.permute.xlu0 %436 }
 0x12c   :  { %v538_v49 = vsel %vm210_vm2, %v531_v13, %v525_v22  ;;  %v439_v9 = vpop.permute.xlu1 %438  ;;  %v535_v17 = vsel %vm210_vm2, %v525_v22, %v531_v13 }
 0x12d   :  { %v542_v29 = vsel %vm1021_vm3, %v1154_v48, %v538_v49  ;;  %v543_v19 = vsel %vm1059_vm4, %v1184_v39, %v535_v17 }
 0x12e   :  { %v548_v63 = vsub.f32 %v883_v4, %v542_v29  ;;  %v549_v13 = vsub.f32 %v877_v2, %v543_v19 }
 0x130   :  { %v1460_v23 = vmul.f32 %v548_v63, %v1451_v11 }
 0x132   :  { %1898 = vst [vmem:[#allocation31_spill] sm:$0xff] %v1460_v23 }
 0x133   :  { %560 = vrot.lane.b32.xlu1 %v1460_v23, %s839_s24  ;;  %v642_v31 = vpop.permute.xlu2 %641  ;;  %v443_v26 = vpop.permute.xlu0 %442  ;;  %v77_v23 = vmul.f32 %v61_v47, %v61_v47 }
 0x134   :  { %v445_v49 = vpop.permute.xlu1 %444  ;;  %v1469_v29 = vsel %vm332_vm6, %v437_v21, %v443_v26  ;;  %v1473_v22 = vsel %vm332_vm6, %v443_v26, %v437_v21 }
 0x135   :  { %1899 = vst [vmem:[#allocation32_spill] sm:$0xff] %v1469_v29  ;;  %v1478_v63 = vsel %vm332_vm6, %v439_v9, %v445_v49  ;;  %v1482_v17 = vsel %vm332_vm6, %v445_v49, %v439_v9  ;;  %v1484_v33 = vmul.f32 %v549_v13, %v77_v23 }
 0x136   :  { %1900 = vst [vmem:[#allocation33_spill] sm:$0xff] %v1473_v22  ;;  %v1492_v22 = vmul.f32 %v64_v24, %v64_v24 }
 0x137   :  { %1901 = vst [vmem:[#allocation34_spill] sm:$0xff] %v1478_v63 }
 0x138   :  { %1902 = vst [vmem:[#allocation35_spill] sm:$0xff] %v1482_v17  ;;  %v65_v17 = vld [vmem:[#allocation5 + $0x78] sm:$0xff] }
 0x139   :  { %1903 = vst [vmem:[#allocation36_spill] sm:$0xff] %v1484_v33 }
 0x13b   :  { %566 = vrot.lane.b32.xlu1 %v1484_v33, %s839_s24  ;;  %v648_v29 = vpop.permute.xlu2 %647  ;;  %v499_v26 = vpop.permute.xlu0 %498 }
 0x13c   :  { %v652_v21 = vsel %vm332_vm6, %v642_v31, %v648_v29  ;;  %v1490_v19 = vpop.permute.xlu1 %500  ;;  %v655_v49 = vsel %vm332_vm6, %v648_v29, %v642_v31 }
 0x13d   :  { %v659_v9 = vsel %vm1086_vm5, %v1154_v48, %v652_v21  ;;  %v660_v33 = vsel %vm1144_vm7, %v1184_v39, %v655_v49 }
 0x13e   :  { %v665_v47 = vsub.f32 %v883_v4, %v659_v9  ;;  %v666_v21 = vsub.f32 %v877_v2, %v660_v33  ;;  %v1527_v9 = vmul.f32 %v65_v17, %v65_v17 }
 0x140   :  { %v1501_v13 = vmul.f32 %v665_v47, %v1492_v22  ;;  %v1530_v47 = vmul.f32 %v666_v21, %v1527_v9 }
 0x142   :  { %1904 = vst [vmem:[#allocation37_spill] sm:$0xff] %v1501_v13 }
 0x143   :  { %677 = vrot.lane.b32.xlu1 %v1501_v13, %s840_s25  ;;  %v509_v24 = vpop.permute.xlu2 %508  ;;  %v505_v63 = vpop.permute.xlu0 %504  ;;  %1905 = vst [vmem:[#allocation38_spill] sm:$0xff] %v1530_v47 }
 0x144   :  { %v1511_v4 = vsel %vm210_vm2, %v1401_v60, %v509_v24  ;;  %v1516_v48 = vsel %vm210_vm2, %v509_v24, %v1401_v60  ;;  %v523_v31 = vpop.permute.xlu1 %522  ;;  %v1520_v39 = vsel %vm210_vm2, %v499_v26, %v505_v63  ;;  %v1524_v29 = vsel %vm210_vm2, %v505_v63, %v499_v26 }
 0x14b   :  { %683 = vrot.lane.b32.xlu1 %v1530_v47, %s840_s25  ;;  %v1534_v60 = vpop.permute.xlu2 %619  ;;  %v527_v49 = vpop.permute.xlu0 %526 }
 0x14c   :  { %1906 = vst [vmem:[#allocation39_spill] sm:$0xff] %v1534_v60  ;;  %v529_v24 = vpop.permute.xlu1 %528 }
 0x14d   :  { %v537_v13 = vsel %vm210_vm2, %v529_v24, %v523_v31  ;;  %v534_v2 = vsel %vm210_vm2, %v523_v31, %v529_v24 }
 0x14e   :  { %v540_v63 = vsel %vm1021_vm3, %v1190_v54, %v537_v13  ;;  %v541_v26 = vsel %vm1059_vm4, %v1213_v58, %v534_v2 }
 0x14f   :  { %v546_v33 = vsub.f32 %v871_v1, %v540_v63  ;;  %v547_v31 = vsub.f32 %v881_v3, %v541_v26 }
 0x151   :  { %v1545_v17 = vmul.f32 %v546_v33, %v1451_v11 }
 0x153   :  { %1907 = vst [vmem:[#allocation40_spill] sm:$0xff] %v1545_v17  ;;  %558 = vrot.lane.b32.xlu0 %v1545_v17, %s839_s24  ;;  %v1552_v21 = vpop.permute.xlu2 %625  ;;  %v533_v60 = vpop.permute.xlu0 %532 }
 0x154   :  { %1908 = vst [vmem:[#allocation41_spill] sm:$0xff] %v1552_v21  ;;  %v640_v47 = vpop.permute.xlu1 %639  ;;  %v539_v13 = vsel %vm210_vm2, %v533_v60, %v527_v49  ;;  %v536_v63 = vsel %vm210_vm2, %v527_v49, %v533_v60  ;;  %v1569_v21 = vmul.f32 %v547_v31, %v77_v23 }
 0x155   :  { %v544_v24 = vsel %vm1021_vm3, %v1206_v28, %v539_v13  ;;  %v545_v17 = vsel %vm1059_vm4, %v1226_v14, %v536_v63 }
 0x156   :  { %v550_v2 = vsub.f32 %v869_v0, %v544_v24  ;;  %1909 = vst [vmem:[#allocation42_spill] sm:$0xff] %v1569_v21  ;;  %v551_v60 = vsub.f32 %v885_v5, %v545_v17 }
 0x158   :  { %v1564_v33 = vmul.f32 %v550_v2, %v1451_v11  ;;  %v557_v2 = vmul.f32 %v551_v60, %v77_v23 }
 0x15a   :  { %562 = vrot.lane.b32.xlu2 %v1564_v33, %s839_s24 }
 0x15b   :  { %564 = vrot.lane.b32.xlu0 %v1569_v21, %s839_s24  ;;  %v244_v26 = vpop.permute.xlu2 %243  ;;  %v644_v13 = vpop.permute.xlu0 %643 }
 0x15c   :  { %v646_v49 = vpop.permute.xlu1 %645 }
 0x15d   :  { %v651_v11 = vsel %vm332_vm6, %v640_v47, %v646_v49  ;;  %v654_v24 = vsel %vm332_vm6, %v646_v49, %v640_v47 }
 0x15e   :  { %v657_v31 = vsel %vm1086_vm5, %v1190_v54, %v651_v11  ;;  %v658_v17 = vsel %vm1144_vm7, %v1213_v58, %v654_v24  ;;  %v1911_v54 = vmov 1.0  }
 0x15f   :  { %v663_v63 = vsub.f32 %v871_v1, %v657_v31  ;;  %v1597_v47 = vsel %vm138_vm9, 0.0, %v1911_v54  ;;  %v664_v23 = vsub.f32 %v881_v3, %v658_v17 }
 0x161   :  { %v1592_v21 = vmul.f32 %v663_v63, %v1492_v22  ;;  %v1629_v46 = vmul.f32 %v664_v23, %v1527_v9 }
 0x162   :  { %568 = vrot.lane.b32.xlu2 %v557_v2, %s839_s24 }
 0x163   :  { %1910 = vst [vmem:[#allocation43_spill] sm:$0xff] %v1592_v21  ;;  %675 = vrot.lane.b32.xlu0 %v1592_v21, %s840_s25  ;;  %v250_v1 = vpop.permute.xlu2 %249  ;;  %v650_v49 = vpop.permute.xlu0 %649 }
 0x164   :  { %v254_v58 = vsel %vm251_vm10, %v244_v26, %v250_v1  ;;  %v257_v60 = vsel %vm251_vm10, %v250_v1, %v244_v26  ;;  %v507_v11 = vpop.permute.xlu1 %506  ;;  %v653_v24 = vsel %vm332_vm6, %v644_v13, %v650_v49  ;;  %v656_v17 = vsel %vm332_vm6, %v650_v49, %v644_v13 }
 0x165   :  { %v262_v31 = vmul.f32 %v254_v58, %v1102_v40  ;;  %v263_v63 = vmul.f32 %v257_v60, %v1597_v47  ;;  %v1613_v21 = vsel %vm210_vm2, %v1490_v19, %v507_v11  ;;  %v1618_v3 = vsel %vm210_vm2, %v507_v11, %v1490_v19 }
 0x166   :  { %1912 = vst [vmem:[#allocation44_spill] sm:$0xff] %v1613_v21  ;;  %v661_v26 = vsel %vm1086_vm5, %v1206_v28, %v653_v24  ;;  %v662_v19 = vsel %vm1144_vm7, %v1226_v14, %v656_v17 }
 0x167   :  { %v667_v1 = vsub.f32 %v869_v0, %v661_v26  ;;  %v274_v58 = vsub.f32 %v1293_v44, %v262_v31  ;;  %v275_v60 = vsub.f32 %v1320_v27, %v263_v63  ;;  %v668_v27 = vsub.f32 %v885_v5, %v662_v19 }
 0x169   :  { %v1632_v21 = vmul.f32 %v667_v1, %v1492_v22  ;;  %v294_v28 = vadd.f32 %v1008_v37, %v274_v58  ;;  %v295_v44 = vadd.f32 %v1033_v52, %v275_v60  ;;  %v1649_v36 = vmul.f32 %v668_v27, %v1527_v9 }
 0x16a   :  { %v1657_v37 = vsel %vm126_vm11, 0.0, %v1911_v54 }
 0x16b   :  { %681 = vrot.lane.b32.xlu0 %v1629_v46, %s840_s25  ;;  %679 = vrot.lane.b32.xlu2 %v1632_v21, %s840_s25  ;;  %v366_v0 = vpop.permute.xlu2 %365  ;;  %v318_v14 = vsub.f32 %v294_v28, %v1311_v25  ;;  %v319_v22 = vsub.f32 %v295_v44, %v1315_v41  ;;  %v1654_v13 = vpop.permute.xlu0 %615 }
 0x16c   :  { %v1659_v5 = vpop.permute.xlu1 %617 }
 0x16d   :  { %v390_v25 = vadd.f32 %v1347_v38, %v318_v14  ;;  %v391_v41 = vadd.f32 %v1383_v50, %v319_v22 }
 0x173   :  { %685 = vrot.lane.b32.xlu2 %v1649_v36, %s840_s25  ;;  %v372_v52 = vpop.permute.xlu2 %371  ;;  %v1675_v17 = vpop.permute.xlu0 %621 }
 0x174   :  { %v376_v55 = vsel %vm373_vm12, %v366_v0, %v372_v52  ;;  %v379_v8 = vsel %vm373_vm12, %v372_v52, %v366_v0  ;;  %v1677_v1 = vpop.permute.xlu1 %623 }
 0x175   :  { %v384_v9 = vmul.f32 %v376_v55, %v1031_v51  ;;  %v385_v49 = vmul.f32 %v379_v8, %v1657_v37 }
 0x177   :  { %v396_v23 = vsub.f32 %v390_v25, %v384_v9  ;;  %v397_v11 = vsub.f32 %v391_v41, %v385_v49 }
 0x179   :  { %v434_v24 = vadd.f32 %v1057_v7, %v396_v23  ;;  %v435_v31 = vadd.f32 %v1095_v45, %v397_v11 }
 0x17b   :  { %v458_v63 = vsub.f32 %v434_v24, %v1372_v62  ;;  %v459_v26 = vsub.f32 %v435_v31, %v1376_v34  ;;  %v1915_v24 = vld [vmem:[#allocation30_spill] sm:$0xff] }
 0x17d   :  { %v496_v38 = vadd.f32 %v1123_v6, %v458_v63  ;;  %v497_v50 = vadd.f32 %v1237_v59, %v459_v26 }
 0x17f   :  { %v520_v58 = vsub.f32 %v496_v38, %v1516_v48  ;;  %v521_v60 = vsub.f32 %v497_v50, %v1511_v4 }
 0x181   :  { %v1684_v7 = vadd.f32 %v1564_v33, %v520_v58  ;;  %v1686_v45 = vadd.f32 %v557_v2, %v521_v60 }
 0x184   :  { %v240_v62 = vpop.permute.xlu0 %239 }
 0x185   :  { %v242_v19 = vpop.permute.xlu1 %241 }
 0x18c   :  { %v246_v34 = vpop.permute.xlu0 %245 }
 0x18d   :  { %v248_v0 = vpop.permute.xlu1 %247  ;;  %v252_v28 = vsel %vm251_vm10, %v240_v62, %v246_v34  ;;  %v255_v6 = vsel %vm251_vm10, %v246_v34, %v240_v62  ;;  %v1916_v62 = vld [vmem:[#allocation13_spill] sm:$0xff]  ;;  %v1917_v34 = vld [vmem:[#allocation15_spill] sm:$0xff] }
 0x18e   :  { %v253_v59 = vsel %vm251_vm10, %v242_v19, %v248_v0  ;;  %v256_v4 = vsel %vm251_vm10, %v248_v0, %v242_v19  ;;  %v258_v48 = vmul.f32 %v252_v28, %v1102_v40  ;;  %v259_v33 = vmul.f32 %v255_v6, %v1597_v47  ;;  %v1918_v28 = vld [vmem:[#allocation14_spill] sm:$0xff] }
 0x18f   :  { %v260_v2 = vmul.f32 %v253_v59, %v1102_v40  ;;  %v261_v44 = vmul.f32 %v256_v4, %v1597_v47  ;;  %v1919_v59 = vld [vmem:[#allocation16_spill] sm:$0xff] }
 0x190   :  { %v270_v27 = vsub.f32 %v1352_v12, %v258_v48  ;;  %v271_v14 = vsub.f32 %v1385_v61, %v259_v33  ;;  %v1920_v48 = vld [vmem:[#allocation32_spill] sm:$0xff] }
 0x191   :  { %v272_v22 = vsub.f32 %v1359_v43, %v260_v2  ;;  %v273_v52 = vsub.f32 %v1392_v15, %v261_v44  ;;  %v1921_v2 = vld [vmem:[#allocation33_spill] sm:$0xff] }
 0x192   :  { %v290_v8 = vadd.f32 %v1035_v53, %v270_v27  ;;  %v291_v25 = vadd.f32 %v1067_v16, %v271_v14  ;;  %v1913_v53 = vld [vmem:[#allocation29_spill] sm:$0xff]  ;;  %v1922_v27 = vld [vmem:[#allocation34_spill] sm:$0xff]  ;;  %v1923_v14 = vld [vmem:[#allocation35_spill] sm:$0xff] }
 0x193   :  { %v292_v9 = vadd.f32 %v1040_v56, %v272_v22  ;;  %v293_v40 = vadd.f32 %v1069_v20, %v273_v52  ;;  %v1924_v52 = vld [vmem:[#allocation17_spill] sm:$0xff] }
 0x194   :  { %v362_v55 = vpop.permute.xlu0 %361  ;;  %v314_v47 = vsub.f32 %v290_v8, %v1426_v18  ;;  %v315_v12 = vsub.f32 %v291_v25, %v1430_v57  ;;  %v1925_v8 = vld [vmem:[#allocation20_spill] sm:$0xff] }
 0x195   :  { %v364_v41 = vpop.permute.xlu1 %363  ;;  %v316_v61 = vsub.f32 %v292_v9, %v1435_v32  ;;  %v317_v43 = vsub.f32 %v293_v40, %v1439_v30  ;;  %v1914_v30 = vld [vmem:[#allocation28_spill] sm:$0xff]  ;;  %v1927_v40 = vld [vmem:[#allocation22_spill] sm:$0xff] }
 0x196   :  { %v386_v23 = vadd.f32 %v1409_v42, %v314_v47  ;;  %v387_v11 = vadd.f32 %v1913_v53, %v315_v12 }
 0x197   :  { %v388_v42 = vadd.f32 %v1914_v30, %v316_v61  ;;  %v389_v31 = vadd.f32 %v1915_v24, %v317_v43  ;;  %v1932_v30 = vld [vmem:[#allocation25_spill] sm:$0xff]  ;;  %v1933_v24 = vld [vmem:[#allocation27_spill] sm:$0xff] }
 0x19c   :  { %v368_v49 = vpop.permute.xlu0 %367 }
 0x19d   :  { %v370_v15 = vpop.permute.xlu1 %369  ;;  %v374_v16 = vsel %vm373_vm12, %v362_v55, %v368_v49  ;;  %v377_v56 = vsel %vm373_vm12, %v368_v49, %v362_v55  ;;  %v1928_v49 = vld [vmem:[#allocation44_spill] sm:$0xff] }
 0x19e   :  { %v375_v20 = vsel %vm373_vm12, %v364_v41, %v370_v15  ;;  %v378_v18 = vsel %vm373_vm12, %v370_v15, %v364_v41  ;;  %v380_v57 = vmul.f32 %v374_v16, %v1031_v51  ;;  %v381_v32 = vmul.f32 %v377_v56, %v1657_v37  ;;  %v1926_v41 = vld [vmem:[#allocation18_spill] sm:$0xff]  ;;  %v1930_v16 = vld [vmem:[#allocation36_spill] sm:$0xff] }
 0x19f   :  { %v382_v63 = vmul.f32 %v375_v20, %v1031_v51  ;;  %v383_v26 = vmul.f32 %v378_v18, %v1657_v37  ;;  %v1931_v18 = vld [vmem:[#allocation19_spill] sm:$0xff] }
 0x1a0   :  { %v392_v38 = vsub.f32 %v386_v23, %v380_v57  ;;  %v393_v50 = vsub.f32 %v387_v11, %v381_v32  ;;  %v135_v23 = vsel %vm133_vm13, 0.0, %v1911_v54 }
 0x1a1   :  { %v394_v58 = vsub.f32 %v388_v42, %v382_v63  ;;  %v395_v60 = vsub.f32 %v389_v31, %v383_v26  ;;  %v628_v63 = vsel %vm113_vm0, %v1659_v5, %v1677_v1  ;;  %v631_v26 = vsel %vm113_vm0, %v1677_v1, %v1659_v5 }
 0x1a2   :  { %v430_v19 = vadd.f32 %v1916_v62, %v392_v38  ;;  %v431_v0 = vadd.f32 %v1917_v34, %v393_v50 }
 0x1a3   :  { %v432_v6 = vadd.f32 %v1918_v28, %v394_v58  ;;  %v433_v4 = vadd.f32 %v1919_v59, %v395_v60 }
 0x1a4   :  { %v454_v33 = vsub.f32 %v430_v19, %v1920_v48  ;;  %v455_v44 = vsub.f32 %v431_v0, %v1921_v2  ;;  %v131_v19 = vsel %vm129_vm15, 0.0, %v1911_v54  ;;  %v1935_v48 = vld [vmem:[#allocation37_spill] sm:$0xff]  ;;  %v1936_v54 = vld [vmem:[#allocation38_spill] sm:$0xff] }
 0x1a5   :  { %v456_v51 = vsub.f32 %v432_v6, %v1922_v27  ;;  %v457_v37 = vsub.f32 %v433_v4, %v1923_v14  ;;  %v561_v22 = vpop.permute.xlu1 %560  ;;  %v1937_v27 = vld [vmem:[#allocation12_spill] sm:$0xff] }
 0x1a6   :  { %v492_v55 = vadd.f32 %v1924_v52, %v454_v33  ;;  %v493_v25 = vadd.f32 %v1925_v8, %v455_v44 }
 0x1a7   :  { %v494_v9 = vadd.f32 %v1926_v41, %v456_v51  ;;  %v495_v47 = vadd.f32 %v1927_v40, %v457_v37  ;;  %v1941_v40 = vld [vmem:[#allocation39_spill] sm:$0xff] }
 0x1a8   :  { %v516_v12 = vsub.f32 %v492_v55, %v1524_v29  ;;  %v517_v61 = vsub.f32 %v493_v25, %v1520_v39  ;;  %v1929_v29 = vld [vmem:[#allocation31_spill] sm:$0xff]  ;;  %v1938_v55 = vld [vmem:[#allocation21_spill] sm:$0xff] }
 0x1a9   :  { %v518_v43 = vsub.f32 %v494_v9, %v1618_v3  ;;  %v519_v15 = vsub.f32 %v495_v47, %v1928_v49  ;;  %v1939_v25 = vld [vmem:[#allocation23_spill] sm:$0xff]  ;;  %v1940_v9 = vld [vmem:[#allocation41_spill] sm:$0xff] }
 0x1aa   :  { %v629_v47 = vsel %vm113_vm0, %v1941_v40, %v1940_v9 }
 0x1ab   :  { %v585_v35 = vadd.f32 %v1929_v29, %v518_v43  ;;  %v586_v56 = vadd.f32 %v1930_v16, %v519_v15  ;;  %v632_v43 = vsel %vm113_vm0, %v1940_v9, %v1941_v40  ;;  %v1942_v29 = vld [vmem:[#allocation40_spill] sm:$0xff]  ;;  %v1943_v16 = vld [vmem:[#allocation42_spill] sm:$0xff] }
 0x1ad   :  { %v567_v53 = vpop.permute.xlu1 %566 }
 0x1ae   :  { %v572_v11 = vsel %vm570_vm14, %v561_v22, %v567_v53  ;;  %v575_v39 = vsel %vm570_vm14, %v567_v53, %v561_v22 }
 0x1af   :  { %v579_v20 = vmul.f32 %v575_v39, %v135_v23  ;;  %v580_v3 = vmul.f32 %v572_v11, %v1931_v18 }
 0x1b1   :  { %v591_v57 = vsub.f32 %v585_v35, %v579_v20  ;;  %v592_v32 = vsub.f32 %v586_v56, %v580_v3  ;;  %v583_v35 = vadd.f32 %v1942_v29, %v516_v12  ;;  %v584_v56 = vadd.f32 %v1943_v16, %v517_v61 }
 0x1b3   :  { %v611_v42 = vadd.f32 %v1932_v30, %v591_v57  ;;  %v612_v31 = vadd.f32 %v1933_v24, %v592_v32 }
 0x1b4   :  { %v563_v38 = vpop.permute.xlu2 %562 }
 0x1b5   :  { %v678_v50 = vpop.permute.xlu1 %677  ;;  %v635_v58 = vsub.f32 %v611_v42, %v631_v26  ;;  %v636_v60 = vsub.f32 %v612_v31, %v628_v63  ;;  %v1944_v26 = vld [vmem:[#allocation24_spill] sm:$0xff] }
 0x1b7   :  { %v702_v33 = vadd.f32 %v1935_v48, %v635_v58  ;;  %v703_v2 = vadd.f32 %v1936_v54, %v636_v60  ;;  %v627_v60 = vsel %vm113_vm0, %v1654_v13, %v1675_v17 }
 0x1bc   :  { %v569_v34 = vpop.permute.xlu2 %568 }
 0x1bd   :  { %v684_v0 = vpop.permute.xlu1 %683  ;;  %v573_v28 = vsel %vm570_vm14, %v563_v38, %v569_v34  ;;  %v576_v5 = vsel %vm570_vm14, %v569_v34, %v563_v38 }
 0x1be   :  { %v689_v1 = vsel %vm687_vm1, %v678_v50, %v684_v0  ;;  %v692_v6 = vsel %vm687_vm1, %v684_v0, %v678_v50  ;;  %v581_v59 = vmul.f32 %v576_v5, %v135_v23  ;;  %v582_v4 = vmul.f32 %v573_v28, %v1931_v18  ;;  %v1945_v50 = vld [vmem:[#allocation26_spill] sm:$0xff] }
 0x1bf   :  { %v696_v44 = vmul.f32 %v692_v6, %v131_v19  ;;  %v697_v51 = vmul.f32 %v689_v1, %v1937_v27  ;;  %v1946_v1 = vld [vmem:[#allocation43_spill] sm:$0xff] }
 0x1c0   :  { %v593_v14 = vsub.f32 %v1684_v7, %v581_v59  ;;  %v594_v37 = vsub.f32 %v1686_v45, %v582_v4 }
 0x1c1   :  { %v708_v22 = vsub.f32 %v702_v33, %v696_v44  ;;  %v709_v52 = vsub.f32 %v703_v2, %v697_v51 }
 0x1c2   :  { %v613_v8 = vadd.f32 %v1938_v55, %v593_v14  ;;  %v614_v41 = vadd.f32 %v1939_v25, %v594_v37 }
 0x1c3   :  { %714 = vst [vmem:[#allocation7 + $0x10] sm:$0xff] %v708_v22 }
 0x1c4   :  { %715 = vst [vmem:[#allocation7 + $0x18] sm:$0xff] %v709_v52  ;;  %v637_v7 = vsub.f32 %v613_v8, %v632_v43  ;;  %v638_v45 = vsub.f32 %v614_v41, %v629_v47 }
 0x1c5   :  { %v680_v49 = vpop.permute.xlu2 %679  ;;  %v559_v15 = vpop.permute.xlu0 %558 }
 0x1c6   :  { %v705_v53 = vadd.f32 %v1649_v36, %v638_v45  ;;  %v704_v39 = vadd.f32 %v1632_v21, %v637_v7 }
 0x1cd   :  { %v686_v11 = vpop.permute.xlu2 %685  ;;  %v565_v20 = vpop.permute.xlu0 %564 }
 0x1ce   :  { %v690_v3 = vsel %vm687_vm1, %v680_v49, %v686_v11  ;;  %v693_v57 = vsel %vm687_vm1, %v686_v11, %v680_v49  ;;  %v571_v32 = vsel %vm570_vm14, %v559_v15, %v565_v20  ;;  %v574_v36 = vsel %vm570_vm14, %v565_v20, %v559_v15 }
 0x1cf   :  { %v698_v30 = vmul.f32 %v693_v57, %v131_v19  ;;  %v699_v21 = vmul.f32 %v690_v3, %v1937_v27  ;;  %v577_v42 = vmul.f32 %v574_v36, %v135_v23  ;;  %v578_v12 = vmul.f32 %v571_v32, %v1931_v18 }
 0x1d0   :  { %v630_v23 = vsel %vm113_vm0, %v1675_v17, %v1654_v13 }
 0x1d1   :  { %v710_v61 = vsub.f32 %v704_v39, %v698_v30  ;;  %v711_v24 = vsub.f32 %v705_v53, %v699_v21  ;;  %v589_v31 = vsub.f32 %v583_v35, %v577_v42  ;;  %v590_v63 = vsub.f32 %v584_v56, %v578_v12 }
 0x1d3   :  { %716 = vst [vmem:[#allocation7 + $0x20] sm:$0xff] %v710_v61  ;;  %v609_v38 = vadd.f32 %v1944_v26, %v589_v31  ;;  %v610_v58 = vadd.f32 %v1945_v50, %v590_v63 }
 0x1d4   :  { %717 = vst [vmem:[#allocation7 + $0x28] sm:$0xff] %v711_v24 }
 0x1d5   :  { %v676_v18 = vpop.permute.xlu0 %675  ;;  %v633_v62 = vsub.f32 %v609_v38, %v630_v23  ;;  %v634_v34 = vsub.f32 %v610_v58, %v627_v60 }
 0x1d7   :  { %v700_v6 = vadd.f32 %v1946_v1, %v633_v62  ;;  %v701_v59 = vadd.f32 %v1629_v46, %v634_v34 }
 0x1dd   :  { %v682_v0 = vpop.permute.xlu0 %681 }
 0x1de   :  { %v688_v28 = vsel %vm687_vm1, %v676_v18, %v682_v0  ;;  %v691_v5 = vsel %vm687_vm1, %v682_v0, %v676_v18 }
 0x1df   :  { %v694_v4 = vmul.f32 %v691_v5, %v131_v19  ;;  %v695_v48 = vmul.f32 %v688_v28, %v1937_v27 }
 0x1e1   :  { %v706_v13 = vsub.f32 %v700_v6, %v694_v4  ;;  %v707_v17 = vsub.f32 %v701_v59, %v695_v48 }
 0x1e3   :  { %712 = vst [vmem:[#allocation7] sm:$0xff] %v706_v13 }
 0x1e4   :  { %713 = vst [vmem:[#allocation7 + $0x8] sm:$0xff] %v707_v17 }
 0x1e5   :  { %730 = dma.vmem_to_hbm [thread:$0]  %s723_s27, 768, %s725_s30, [#allocation4], %s830_s17, %s830_s17, %s831_s18  }
 0x1e6   :  { %827 = dma.done.wait [#allocation4], 768  }
 0x1e7   :  { %828 = vsyncadd [#allocation4], 4294966528 }
 0x1e8   :  { %735 = vsyncpa [#allocation3], 1 }
 0x1e9   :  { %736 = vsyncpa [#allocation6], 1 }
 0x1ea   :  { %737 = vsyncpa [#allocation4], 1 }

</bundles_post_ra>
